<compile_context>
chip_gen: v5e
topology: v5e:2x2
jax: 0.10.0
libtpu: 0.0.40
codegen_flags: <defaults>
</compile_context>

<pallas_src>
import functools
import math

import numpy as np
import jax
import jax.numpy as jnp
from jax.experimental import pallas as pl
from jax.experimental.pallas import tpu as pltpu


def _drop_path_kernel(keep_ref, x_ref, o_ref, *, inv_keep_prob):
    """One grid step: one lane-dense (1, TR, L) tile of one batch sample.

    keep_ref: (B,) int32 SMEM ref (scalar prefetch) -- per-sample keep mask.
    """
    b = pl.program_id(0)
    # 0.0 or 1/keep_prob (scalar SMEM load + convert; negligible vs the DMA).
    scale = keep_ref[b].astype(jnp.float32) * inv_keep_prob
    x = x_ref[...]
    # Multiply in the input dtype (bf16 VALU on v6e/v7x; upcasts on v5e).
    o_ref[...] = (x * scale.astype(x.dtype)).astype(o_ref.dtype)


def drop_path_pallas(x, *, key, drop_prob=0.0, training=False):
    """Stochastic-depth forward matching torch `drop_path` semantics."""
    if drop_prob == 0.0 or not training:
        return x
    keep_prob = 1.0 - float(drop_prob)

    orig_shape = x.shape
    B = orig_shape[0]
    F = math.prod(orig_shape[1:])

    # Per-sample keep mask in plain JAX: floor(keep_prob + U[0,1)) in {0, 1}.
    u = jax.random.uniform(key, (B,), dtype=jnp.float32)
    keep = jnp.floor(keep_prob + u).astype(jnp.int32)  # (B,) in {0, 1}

    itemsize = jnp.dtype(x.dtype).itemsize
    # Dtype-native sublane packing: f32 -> 8, bf16/f16 -> 16, int8/fp8 -> 32.
    sub = max(8, 32 // itemsize)

    # Lane width: largest of {1024, 512, 256, 128} that divides F (no padding);
    # otherwise the candidate minimizing the padded size (prefer larger L).
    candidates = (1024, 512, 256, 128)
    L = None
    for cand in candidates:
        if F >= cand and F % cand == 0:
            L = cand
            break
    if L is None:
        best = None
        for cand in candidates:
            fp = -(-max(F, 1) // cand) * cand
            if best is None or fp < best[0]:
                best = (fp, cand)
        L = best[1]
    R = -(-F // L)            # rows of width L (>= 1)
    F_pad = R * L             # == F whenever some candidate divides F

    # Rows per block: ~8 MiB tiles.  Live VMEM is ~4x tile (in + out, each
    # double-buffered) = 32 MiB -> fits v7x's 64 MiB physical VMEM with room,
    # huge headroom on v5e/v6e (128 MiB).
    TARGET_TILE_BYTES = 8 * 1024 * 1024
    target_rows = max(sub, (TARGET_TILE_BYTES // (L * itemsize)) // sub * sub)
    if R <= target_rows:
        TR = R                # full row extent -> single (possibly odd) block
    else:
        TR = target_rows      # multiple of sub; ragged grid masks last block

    # Ensure >= 2 total grid steps when possible so v7x's two TensorCores
    # both get work (both axes are "parallel"); neutral on v5e/v6e.
    if B * (-(-R // TR)) < 2 and R > sub:
        TR = max(sub, (((R + 1) // 2) // sub) * sub)

    grid = (B, -(-R // TR))   # ragged over rows; no row padding / slicing

    # Fold non-batch dims into a lane-dense (B, R, L) slab (reshape is free).
    x_flat = x.reshape(B, F)
    if F_pad > F:
        # Only when no lane width divides F (e.g. F < 128 or odd F).
        x_flat = jnp.pad(x_flat, ((0, 0), (0, F_pad - F)))
    x3 = x_flat.reshape(B, R, L)

    kernel = functools.partial(_drop_path_kernel, inv_keep_prob=1.0 / keep_prob)

    out3 = pl.pallas_call(
        kernel,
        out_shape=jax.ShapeDtypeStruct((B, R, L), x.dtype),
        grid_spec=pltpu.PrefetchScalarGridSpec(
            num_scalar_prefetch=1,
            grid=grid,
            in_specs=[pl.BlockSpec((1, TR, L), lambda b, r, keep: (b, r, 0))],
            out_specs=pl.BlockSpec((1, TR, L), lambda b, r, keep: (b, r, 0)),
        ),
        compiler_params=pltpu.CompilerParams(
            dimension_semantics=("parallel", "parallel"),
            vmem_limit_bytes=48 * 1024 * 1024,
        ),
        cost_estimate=pl.CostEstimate(
            flops=B * F_pad,
            transcendentals=0,
            bytes_accessed=2 * B * F_pad * itemsize,
        ),
    )(keep, x3)

    if F_pad > F:
        return out3.reshape(B, F_pad)[:, :F].reshape(orig_shape)
    return out3.reshape(orig_shape)


def _check(x, y, keep_prob):
    """Each sample must be either entirely dropped or scaled by 1/keep_prob."""
    xn, yn = np.asarray(x), np.asarray(y)
    B = xn.shape[0]
    for b in range(B):
        all_zero = np.allclose(yn[b], 0.0)
        scaled = np.allclose(yn[b], xn[b] / keep_prob, rtol=1e-6, atol=1e-6)
        assert all_zero or scaled, f"sample {b} has invalid drop-path output"


if __name__ == "__main__":
    root = jax.random.PRNGKey(0)
    k_x1, k_x2, k_x3, k_m1, k_m2, k_m3 = jax.random.split(root, 6)

    drop_prob = 0.25
    keep_prob = 1.0 - drop_prob

    # (B, N, D) token layout as used inside the Segmenter mask-transformer head.
    x_tok = jax.random.normal(k_x1, (2, 8, 32), dtype=jnp.float32)
    # NCHW-style activation (F a multiple of 128 -> no padding, ragged grid).
    x_img = jax.random.normal(k_x2, (2, 4, 16, 16), dtype=jnp.float32)
    # Awkward shape (F=105 < 128) to exercise the minimal-padding fallback.
    x_odd = jax.random.normal(k_x3, (2, 3, 5, 7), dtype=jnp.float32)

    # eval mode -> identity (no kernel launch, exact match to torch semantics)
    y_eval = drop_path_pallas(x_tok, key=k_m1, drop_prob=drop_prob, training=False)
    assert jnp.array_equal(y_eval, x_tok)

    # training mode -> per-sample stochastic depth
    y_tok = drop_path_pallas(x_tok, key=k_m1, drop_prob=drop_prob, training=True)
    y_img = drop_path_pallas(x_img, key=k_m2, drop_prob=drop_prob, training=True)
    y_odd = drop_path_pallas(x_odd, key=k_m3, drop_prob=drop_prob, training=True)
    y_tok = jax.block_until_ready(y_tok)
    y_img = jax.block_until_ready(y_img)
    y_odd = jax.block_until_ready(y_odd)

    _check(x_tok, y_tok, keep_prob)
    _check(x_img, y_img, keep_prob)
    _check(x_odd, y_odd, keep_prob)

    print("KERNEL_OK")
</pallas_src>

<mosaic_0001>
module attributes {stable_mosaic.version = 11 : i64} {
  func.func @_drop_path_kernel(%arg0: i32, %arg1: i32, %arg2: memref<2xi32, #tpu.memory_space<smem>>, %arg3: memref<1x1x256xf32, #tpu.memory_space<vmem>>, %arg4: memref<1x1x256xf32, #tpu.memory_space<vmem>>) attributes {dimension_semantics = [#tpu.dimension_semantics<parallel>, #tpu.dimension_semantics<parallel>], iteration_bounds = array<i64: 2, 1>, scalar_prefetch = 1 : i64, scratch_operands = 0 : i64, tpu.core_type = #tpu.core_type<tc>, window_params = [{transform_indices = @transform_0, window_bounds = array<i64: 1, 1, 256>}, {transform_indices = @transform_1, window_bounds = array<i64: 1, 1, 256>}]} {
    %0 = arith.index_cast %arg0 : i32 to index
    %1 = memref.load %arg2[%0] : memref<2xi32, #tpu.memory_space<smem>>
    %2 = arith.sitofp %1 : i32 to f32
    %cst = arith.constant 1.33333337 : f32
    %3 = arith.mulf %2, %cst : f32
    %c0 = arith.constant 0 : index
    %c0_0 = arith.constant 0 : index
    %c0_1 = arith.constant 0 : index
    %4 = vector.load %arg3[%c0, %c0_0, %c0_1] : memref<1x1x256xf32, #tpu.memory_space<vmem>>, vector<1x1x256xf32>
    %5 = vector.broadcast %3 : f32 to vector<1x1x256xf32>
    %6 = arith.mulf %4, %5 : vector<1x1x256xf32>
    %c0_2 = arith.constant 0 : index
    %c0_3 = arith.constant 0 : index
    %c0_4 = arith.constant 0 : index
    %7 = vector.load %arg4[%c0_2, %c0_3, %c0_4] : memref<1x1x256xf32, #tpu.memory_space<vmem>>, vector<1x1x256xf32>
    tpu.vector_store %arg4[%c0_2, %c0_3, %c0_4], %6 {strides = array<i32>} : memref<1x1x256xf32, #tpu.memory_space<vmem>>, vector<1x1x256xf32>,
    return
  }
  func.func @transform_0(%arg0: i32, %arg1: i32, %arg2: memref<2xi32, #tpu.memory_space<smem>>) -> (i32, i32, i32) {
    %c0_i32 = arith.constant 0 : i32
    %c0_i32_0 = arith.constant 0 : i32
    return %arg0, %arg1, %c0_i32 : i32, i32, i32
  }
  func.func @transform_1(%arg0: i32, %arg1: i32, %arg2: memref<2xi32, #tpu.memory_space<smem>>) -> (i32, i32, i32) {
    %c0_i32 = arith.constant 0 : i32
    %c0_i32_0 = arith.constant 0 : i32
    return %arg0, %arg1, %c0_i32 : i32, i32, i32
  }
}

</mosaic_0001>

<bundles_post_ra>
// kernel: tpu_custom_call.1
= control target key start
LH: loop header
LB: loop body
LE: loop exit
PB: predicated region body
PF: predicated region fallthrough
CT: control target
= control target key end

     0   :  { %s476_s12 = smov [#allocation3]   ;;  %s616_s0 = inlined_call_operand.hbm [shape: s32[2], index: 0, kind: input, shape index: {}]   ;;  %s617_s1 = inlined_call_operand.hbm [shape: f32[2,1,256], index: 1, kind: input, shape index: {}]   ;;  %s618_s2 = inlined_call_operand.hbm [shape: f32[2,1,256], index: 2, kind: output, shape index: {}]  }
   0x1   :  { %s8_s11 = sshll.u32 %s616_s0, 4  ;;  %s9_s11 = int_to_ptr.hbm [resolvable:$true] %s8_s11 }
   0x2   :  { %11 = dma.hbm_to_smem %s9_s11, 16, %s476_s12, [#allocation2] }
   0x3   :  { %442 = dma.done.wait [#allocation2], 16 }
   0x4   :  { %443 = vsyncadd [#allocation2], 4294967280 }
   0x5   :  { %14 = sfence }
   0x6   :  { %15 = vsyncpa [#allocation5], 0 }
   0x7   :  { %17 = vsyncpa [#allocation5 + $0x1], 0 }
   0x8   :  { %18 = vsyncpa [#allocation6], 0 }
   0x9   :  { %20 = vsyncpa [#allocation6 + $0x1], 0  ;;  %s495_s13 = smov 0   ;;  %s497_s14 = smov 0  }
   0xa   :  { %s499_s15 = smov 0   ;;  %s501_s16 = smov 0  }
   0xb   :  { %s503_s17 = smov 0   ;;  %s505_s0 = smov 0  }
   0xc LB: > { %s272_s18 = sadd.s32 4294967295, %s474_s0   ;;  %s273_s19 = sadd.s32 4294967294, %s474_s0   ;;  %s474_s0 = sphi %s505_s0, %s26_s0   ;;  %s470_s17 = sphi %s503_s17, %s627_s17   ;;  %s466_s16 = sphi %s501_s16, %s626_s16   ;;  %s462_s15 = sphi %s499_s15, %s625_s15   ;;  %s458_s14 = sphi %s497_s14, %s624_s14   ;;  %s454_s13 = sphi %s495_s13, %s623_s13  }
   0xd   : > { %s38_s20 = sadd.s32 1, %s470_s17  ;;  %s47_s21 = sadd.s32 1, %s462_s15 }
   0xe   : > { %p40_p0 = scmp.ge.s32.totalorder %s38_s20, 2  ;;  %p54_p1 = scmp.ne.s32.totalorder %s462_s15, %s458_s14 }
   0xf   : > { %p55_p2 = scmp.eq.s32.totalorder %s474_s0, 0  ;;  %p60_p3 = scmp.ne.s32.totalorder %s458_s14, %s454_s13 }
  0x10   : > { %s629_s20 = smov (%p40_p0, %s38_s20), 0  ;;  %p61_p5 = scmp.eq.s32.totalorder %s272_s18, 0 }
  0x11   : > { %p536_p4 = por %p55_p2, %p54_p1  ;;  %s42_s23 = ssub.s32 %s470_s17, %s629_s20 }
  0x12   : > { %p86_p6 = scmp.eq.s32.totalorder %s272_s18, 1  ;;  %p45_p7 = scmp.eq.s32.totalorder %s42_s23, 0 }
  0x13   : > { %p542_p8 = por %p61_p5, %p60_p3  ;;  %p92_p10 = scmp.eq.s32.totalorder %s273_s19, 1 }
  0x14   : > { %p546_p9 = por %p86_p6, %p54_p1  ;;  %p275_p12 = scmp.ge.s32.totalorder %s474_s0, 2 }
  0x15   : > { %s551_s26 = scalar_select %p45_p7, %s462_s15, %s47_s21  }
  0x16   : > { %p553_p11 = por %p92_p10, %p60_p3  ;;  %p297_p13 = scmp.lt.s32.totalorder %s474_s0, 2 }
  0x17   : > { %s112_s28 = sand.u32 1, %s462_s15   ;;  %s277_s30 = sshll.u32 %s470_s17, 1 }
  0x18   : > { %s276_s29 = sshll.u32 %s112_s28, 1  ;;  %s122_s5 = scalar_lea.hbm %s617_s1, %s277_s30 }
  0x19   : > { %s116_s6 = scalar_lea.vmem [#allocation4], %s276_s29  ;;  %s124_s8 = sshll.u32 %s122_s5, 4  ;;  %s125_s8 = int_to_ptr.hbm [resolvable:$true] %s124_s8 }
  0x1a   : > { %s126_s7 = sshll.u32 %s116_s6, 4  ;;  %p290_p0 = pnand %p297_p13, %p536_p4  ;;  %s127_s7 = int_to_ptr.vmem [resolvable:$true] %s126_s7 }
  0x1b   : > { %p278_p1 = scmp.ge.s32.totalorder %s474_s0, 1  ;;  %p131_p2 = scmp.lt.s32.totalorder %s474_s0, 3 }
  0x1c   : > { %s113_s9 = scalar_lea.sflag [#allocation5], %s112_s28 }
  0x1d   : > { %292 = dma.hbm_to_vmem [thread:$0]  (!%p290_p0), %s125_s8, 32, %s127_s7, %s113_s9  }
  0x1e   : > { %p132_p3 = pnand %p278_p1, %p131_p2 }
  0x1f   : > { %s569_s10 = sand.u32 (!%p132_p3), 1, %s458_s14  }
  0x20   : > { %135 = sbr.rel (%p132_p3) target bundleno = 54 (0x36), region = 24  ;;  %s279_s11 = sshll.u32 (!%p132_p3), %s569_s10, 1 }
  0x21   : > { %s138_s12 = scalar_lea.sflag (!%p132_p3), [#allocation5], %s569_s10  ;;  %s141_s18 = scalar_lea.vmem (!%p132_p3), [#allocation4], %s279_s11 }
  0x25   : > { %445 = dma.done.wait (%p542_p8), %s138_s12, 32  }
  0x26   : > { %447 = vsyncadd (%p542_p8), %s138_s12, 4294967264  ;;  %s161_s19 = sld [smem:[#allocation3 + %s466_s16]]  ;;  %s282_s21 = sshll.u32 %s466_s16, 1  ;;  %v167_v0 = vlaneseq  ;;  %v164_v1 = vld [vmem:[%s141_s18] sm:$0x3] }
  0x27   : > { %s185_s28 = scalar_lea.hbm %s618_s2, %s282_s21  ;;  %s160_s30 = scalar_lea.vmem [#allocation7], %s279_s11 }
  0x28   : > { %s187_s3 = sshll.u32 %s160_s30, 4  ;;  %s189_s5 = sshll.u32 %s185_s28, 4  ;;  %vm169_vm0 = vcmp.lt.s32.totalorder %v167_v0, 256  ;;  %s188_s3 = int_to_ptr.vmem [resolvable:$true] %s187_s3  ;;  %s190_s5 = int_to_ptr.hbm [resolvable:$true] %s189_s5 }
  0x29   : > { %s173_s24 = scalar_lea.sflag [#allocation6], %s569_s10  ;;  %s404_s16 = sshra.s32 %s190_s5, 4  ;;  %s405_s16 = int_to_ptr.hbm [resolvable:$true] %s404_s16 }
  0x2a   : > { %s406_s6 = scalar_lea.hbm %s405_s16, 2  ;;  %s410_s9 = scalar_lea.hbm %s618_s2, 4 }
  0x2b   : > { %p407_p4 = scmp.ne.s32.totalorder %s405_s16, %s406_s6  ;;  %p411_p7 = scmp.lt.s32.totalorder %s405_s16, %s618_s2 }
  0x2c   : > { %s162_s29 = scvt.s32.f32 %s161_s19  ;;  %p412_p8 = scmp.lt.s32.totalorder %s410_s9, %s406_s6 }
  0x2d   : > { %p408_p5 = pnand %p407_p4, %p546_p9 }
  0x2e   : > { %s163_s4 = smul.f32 1.3333334, %s162_s29  ;;  %p413_p10 = por %p412_p8, %p411_p7 }
  0x2f   : > { %p409_p6 = pneg %p408_p5 }
  0x30   : > { %v165_v2 = vstv %s163_s4 }
  0x31   : > { %v166_v3 = vmul.f32 %v165_v2, %v164_v1  ;;  %p414_p13 = pnand %p413_p10, %p409_p6 }
  0x33   : > { %171 = vst.msk [vmem:[%s160_s30] sm:$0x3] %vm169_vm0, %v166_v3 }
  0x34   : > { %417 = shalt.err (!%p414_p13)
}
  0x35   : > { %287 = dma.vmem_to_hbm [thread:$0]  (%p546_p9), %s188_s3, 32, %s190_s5, %s173_s24  }
  0x36 PF: > { %s201_s10 = sand.u32 1, %s454_s13   ;;  %p294_p0 = pnand %p275_p12, %p553_p11 }
  0x37   : > { %s202_s18 = scalar_lea.sflag [#allocation6], %s201_s10 }
  0x38   : > { %p295_p1 = pneg %p294_p0 }
  0x3a   : > { %449 = dma.done.wait (%p295_p1), %s202_s18, 32  }
  0x3b   : > { %451 = vsyncadd (%p295_p1), %s202_s18, 4294967264  ;;  %s26_s0 = sadd.s32 1, %s474_s0   ;;  %s623_s13 = smov %s458_s14 }
  0x3c   : > { %p23_p2 = scmp.ge.s32.totalorder %s26_s0, 4   ;;  %s624_s14 = smov %s462_s15 }
  0x3d   : > { %s625_s15 = smov %s551_s26  ;;  %s626_s16 = smov %s470_s17 }
  0x3e   : > { %s627_s17 = smov %s629_s20  ;;  %25 = sbr.rel (!%p23_p2) target bundleno = 12 (0xc), region = 69 }
  0x43   :  { %208 = vsyncpa [#allocation5], 1 }
  0x44   :  { %210 = vsyncpa [#allocation5 + $0x1], 1 }
  0x45   :  { %211 = vsyncpa [#allocation6], 1 }
  0x46   :  { %213 = vsyncpa [#allocation6 + $0x1], 1 }

</bundles_post_ra>
